<compile_context>
chip_gen: v6e
topology: v6e:2x2x1
jax: 0.10.0
libtpu: 0.0.40
codegen_flags: <defaults>
</compile_context>

<pallas_src>
import functools

import jax
import jax.numpy as jnp
from jax.experimental import pallas as pl
from jax.experimental.pallas import tpu as pltpu

_LANES = 128
_SUBLANES = 8


def _bce_tile_kernel(x_ref, out_ref, *, tile_rows, num_pos, num_valid,
                     pos_weight, pw_is_one):
    """One [tile_rows, 128] tile of flattened edge logits -> one (8, 128) partial sum.

    Targets are implicit: flat index < num_pos -> label 1, else label 0.  Elements with
    flat index >= num_valid (the OOB region of a partial last block) are dropped.
    """
    i = pl.program_id(0)
    tile_elems = tile_rows * _LANES
    tile_start = i * tile_elems            # int32 scalar; requires num_edges < 2**31
    tile_end = tile_start + tile_elems

    x = x_ref[...].astype(jnp.float32)                               # [TR, 128]
    # Stable softplus pair: exactly one exp + one log1p per element (EUP slot).
    sp_pos = jnp.maximum(x, 0.0) + jnp.log1p(jnp.exp(-jnp.abs(x)))   # softplus(x)
    sp_neg = sp_pos - x                                              # softplus(-x)

    pos_scale = None if pw_is_one else jnp.float32(pos_weight)

    def _write(loss):
        # Vreg-shaped partial sum: pure VPU adds here; the single cross-lane reduce
        # happens once in the JAX wrapper.
        out_ref[0] = loss.reshape(-1, _SUBLANES, _LANES).sum(axis=0)

    full_pos = tile_end <= min(num_pos, num_valid)
    full_neg = jnp.logical_and(tile_start >= num_pos, tile_end <= num_valid)
    boundary = jnp.logical_not(jnp.logical_or(full_pos, full_neg))

    @pl.when(full_pos)
    def _():
        _write(sp_neg if pw_is_one else pos_scale * sp_neg)

    @pl.when(full_neg)
    def _():
        _write(sp_pos)

    @pl.when(boundary)
    def _():
        row = jax.lax.broadcasted_iota(jnp.int32, x.shape, 0)
        lane = jax.lax.broadcasted_iota(jnp.int32, x.shape, 1)
        elem_idx = tile_start + row * _LANES + lane
        pos_loss = sp_neg if pw_is_one else pos_scale * sp_neg
        loss = jnp.where(elem_idx < num_pos, pos_loss, sp_pos)
        # Select (not multiply) so garbage in the OOB part of a partial block cannot
        # propagate NaN/Inf.
        loss = jnp.where(elem_idx < num_valid, loss, 0.0)
        _write(loss)


def _sublane_multiple(dtype) -> int:
    # f32 -> 8 rows, bf16 -> 16, int8/fp8 -> 32 (sub-32-bit dtypes pack along sublanes).
    itemsize = jnp.dtype(dtype).itemsize
    return _SUBLANES * max(1, 4 // max(1, itemsize))


@functools.partial(jax.jit, static_argnames=("pos_weight", "reduction", "block_rows"))
def link_prediction_loss(pred, pos_edge_index, neg_edge_index, *,
                         pos_weight=None, reduction="mean", block_rows=None):
    """pred: [num_edges] logits; pos/neg_edge_index: [2, P] / [2, Q].  Only their static
    sizes matter — the first P logits are positives, the remaining are negatives."""
    if reduction not in ("mean", "sum"):
        # TODO(synk): reduction='none' needs a [num_edges]-shaped output; only the scalar
        # reductions are implemented in-kernel.
        raise NotImplementedError("Only reduction='mean' or 'sum' is implemented.")

    num_pos = int(pos_edge_index.shape[1])
    num_edges = int(pred.shape[0])          # == num_pos + num_neg (module concatenates back)
    if num_edges >= 2 ** 31:
        raise ValueError("num_edges must fit in int32 for in-kernel index math.")

    pw = 1.0 if pos_weight is None else float(pos_weight)
    pw_is_one = (pw == 1.0)

    rows_full = num_edges // _LANES
    kernel_valid = rows_full * _LANES       # elements handled by the Pallas kernel
    itemsize = jnp.dtype(pred.dtype).itemsize
    mult = _sublane_multiple(pred.dtype)

    total = jnp.float32(0.0)

    if rows_full > 0:
        if block_rows is None:
            br = max(mult, (1 << 20) // (_LANES * itemsize))   # ~1 MiB per DMA buffer
        else:
            br = int(block_rows)
        tile_rows = min(br, -(-rows_full // mult) * mult)
        tile_rows = max(mult, (tile_rows // mult) * mult)
        grid_n = -(-rows_full // tile_rows)                    # partial last block allowed

        # Lane-dense [rows, 128] view: free bitcast when num_edges % 128 == 0; otherwise a
        # single slice drops the <128-element tail (summed in plain JAX below).  No pad copy.
        body = pred if kernel_valid == num_edges else pred[:kernel_valid]
        pred2d = body.reshape(rows_full, _LANES)

        kernel = functools.partial(
            _bce_tile_kernel,
            tile_rows=tile_rows, num_pos=num_pos, num_valid=kernel_valid,
            pos_weight=pw, pw_is_one=pw_is_one)

        partials = pl.pallas_call(
            kernel,
            out_shape=jax.ShapeDtypeStruct((grid_n, _SUBLANES, _LANES), jnp.float32),
            grid=(grid_n,),
            in_specs=[pl.BlockSpec((tile_rows, _LANES), lambda i: (i, 0))],
            out_specs=pl.BlockSpec((1, _SUBLANES, _LANES), lambda i: (i, 0, 0)),
            compiler_params=pltpu.CompilerParams(
                # Independent per-tile partial sums -> parallel axis (v7x uses both TCs).
                dimension_semantics=("parallel",)),
        )(pred2d)
        total = total + jnp.sum(partials)

    tail = num_edges - kernel_valid
    if tail > 0:
        x_t = pred[kernel_valid:].astype(jnp.float32)
        idx_t = jnp.arange(kernel_valid, num_edges, dtype=jnp.int32)
        sp_pos_t = jnp.maximum(x_t, 0.0) + jnp.log1p(jnp.exp(-jnp.abs(x_t)))
        sp_neg_t = sp_pos_t - x_t
        tail_loss = jnp.where(idx_t < num_pos, jnp.float32(pw) * sp_neg_t, sp_pos_t)
        total = total + jnp.sum(tail_loss)

    if reduction == "mean":
        total = total / jnp.float32(num_edges)
    return total


def _ref_loss(pred, num_pos, pos_weight=None, reduction="mean"):
    """Pure-JAX reference, same semantics as F.binary_cross_entropy_with_logits."""
    x = pred.astype(jnp.float32)
    n = x.shape[0]
    y = (jnp.arange(n) < num_pos).astype(jnp.float32)
    pw = 1.0 if pos_weight is None else float(pos_weight)
    sp = jax.nn.softplus
    per = pw * y * sp(-x) + (1.0 - y) * sp(x)
    return per.mean() if reduction == "mean" else per.sum()


if __name__ == "__main__":
    key = jax.random.PRNGKey(0)
    master, _ = jax.random.split(key)
    num_nodes = 64

    def make_case(kk, num_pos, num_neg):
        ka, kb, kc = jax.random.split(kk, 3)
        n = num_pos + num_neg
        pred = jax.random.normal(ka, (n,), dtype=jnp.float32)
        pos_idx = jax.random.randint(kb, (2, num_pos), 0, num_nodes, dtype=jnp.int32)
        neg_idx = jax.random.randint(kc, (2, num_neg), 0, num_nodes, dtype=jnp.int32)
        return pred, pos_idx, neg_idx

    cases = [
        # (num_pos, num_neg, pos_weight, reduction, block_rows)
        (800, 1248, None, "mean", 8),    # 2048 edges: boundary tile + fully-negative tile
        (800, 1248, 2.0, "mean", 8),     # pos_weight path
        (1100, 948, None, "mean", 8),    # fully-positive tile + boundary tile
        (900, 1695, None, "mean", 8),    # 2595 edges: partial last block + <128-elem JAX tail
        (800, 1248, 3.0, "sum", None),   # default (large) tile, sum reduction
    ]
    keys = jax.random.split(master, len(cases))
    for kk, (p, q, pw, red, br) in zip(keys, cases):
        pred, pos_idx, neg_idx = make_case(kk, p, q)
        got = link_prediction_loss(pred, pos_idx, neg_idx, pos_weight=pw,
                                   reduction=red, block_rows=br)
        got = jax.block_until_ready(got)
        want = _ref_loss(pred, p, pos_weight=pw, reduction=red)
        assert jnp.allclose(got, want, rtol=1e-5, atol=1e-5), (p, q, pw, red, got, want)

    print("KERNEL_OK")
</pallas_src>

<mosaic_0001>
module attributes {stable_mosaic.version = 11 : i64} {
  func.func @_bce_tile_kernel(%arg0: i32, %arg1: memref<8x128xf32, #tpu.memory_space<vmem>>, %arg2: memref<1x8x128xf32, #tpu.memory_space<vmem>>) attributes {dimension_semantics = [#tpu.dimension_semantics<parallel>], iteration_bounds = array<i64: 2>, scalar_prefetch = 0 : i64, scratch_operands = 0 : i64, tpu.core_type = #tpu.core_type<tc>, window_params = [{transform_indices = @transform_0, window_bounds = array<i64: 8, 128>}, {transform_indices = @transform_1, window_bounds = array<i64: 1, 8, 128>}]} {
    %c1024_i32 = arith.constant 1024 : i32
    %0 = arith.muli %arg0, %c1024_i32 : i32
    %c1024_i32_0 = arith.constant 1024 : i32
    %1 = arith.addi %0, %c1024_i32_0 : i32
    %c0 = arith.constant 0 : index
    %c0_1 = arith.constant 0 : index
    %2 = vector.load %arg1[%c0, %c0_1] : memref<8x128xf32, #tpu.memory_space<vmem>>, vector<8x128xf32>
    %cst = arith.constant 0.000000e+00 : f32
    %3 = vector.broadcast %cst : f32 to vector<8x128xf32>
    %4 = arith.maximumf %2, %3 : vector<8x128xf32>
    %5 = math.absf %2 : vector<8x128xf32>
    %cst_2 = arith.constant 0.000000e+00 : f32
    %6 = vector.broadcast %cst_2 : f32 to vector<8x128xf32>
    %7 = arith.subf %6, %5 : vector<8x128xf32>
    %8 = math.exp %7 : vector<8x128xf32>
    %9 = math.log1p %8 : vector<8x128xf32>
    %10 = arith.addf %4, %9 : vector<8x128xf32>
    %11 = arith.subf %10, %2 : vector<8x128xf32>
    %c800_i32 = arith.constant 800 : i32
    %12 = arith.cmpi sle, %1, %c800_i32 : i32
    %c800_i32_3 = arith.constant 800 : i32
    %13 = arith.cmpi sge, %0, %c800_i32_3 : i32
    %c2048_i32 = arith.constant 2048 : i32
    %14 = arith.cmpi sle, %1, %c2048_i32 : i32
    %15 = arith.andi %13, %14 : i1
    %16 = arith.ori %12, %15 : i1
    %true = arith.constant true
    %17 = arith.xori %16, %true : i1
    %18 = arith.extui %12 : i1 to i32
    %c0_i32 = arith.constant 0 : i32
    %19 = arith.cmpi ne, %18, %c0_i32 : i32
    scf.if %19 {
      %24 = vector.shape_cast %11 : vector<8x128xf32> to vector<1x8x128xf32>
      %cst_6 = arith.constant dense<0.000000e+00> : vector<8x128xf32>
      %25 = vector.multi_reduction <add>, %24, %cst_6 [0] : vector<1x8x128xf32> to vector<8x128xf32>
      %c0_7 = arith.constant 0 : index
      %c0_8 = arith.constant 0 : index
      %c0_9 = arith.constant 0 : index
      %26 = vector.load %arg2[%c0_7, %c0_8, %c0_9] : memref<1x8x128xf32, #tpu.memory_space<vmem>>, vector<1x8x128xf32>
      %27 = vector.shape_cast %26 : vector<1x8x128xf32> to vector<8x128xf32>
      %28 = vector.shape_cast %25 : vector<8x128xf32> to vector<1x8x128xf32>
      tpu.vector_store %arg2[%c0_7, %c0_8, %c0_9], %28 {strides = array<i32>} : memref<1x8x128xf32, #tpu.memory_space<vmem>>, vector<1x8x128xf32>,
    } else {
    }
    %20 = arith.extui %15 : i1 to i32
    %c0_i32_4 = arith.constant 0 : i32
    %21 = arith.cmpi ne, %20, %c0_i32_4 : i32
    scf.if %21 {
      %24 = vector.shape_cast %10 : vector<8x128xf32> to vector<1x8x128xf32>
      %cst_6 = arith.constant dense<0.000000e+00> : vector<8x128xf32>
      %25 = vector.multi_reduction <add>, %24, %cst_6 [0] : vector<1x8x128xf32> to vector<8x128xf32>
      %c0_7 = arith.constant 0 : index
      %c0_8 = arith.constant 0 : index
      %c0_9 = arith.constant 0 : index
      %26 = vector.load %arg2[%c0_7, %c0_8, %c0_9] : memref<1x8x128xf32, #tpu.memory_space<vmem>>, vector<1x8x128xf32>
      %27 = vector.shape_cast %26 : vector<1x8x128xf32> to vector<8x128xf32>
      %28 = vector.shape_cast %25 : vector<8x128xf32> to vector<1x8x128xf32>
      tpu.vector_store %arg2[%c0_7, %c0_8, %c0_9], %28 {strides = array<i32>} : memref<1x8x128xf32, #tpu.memory_space<vmem>>, vector<1x8x128xf32>,
    } else {
    }
    %22 = arith.extui %17 : i1 to i32
    %c0_i32_5 = arith.constant 0 : i32
    %23 = arith.cmpi ne, %22, %c0_i32_5 : i32
    scf.if %23 {
      %24 = tpu.iota {dimensions = array<i32: 0>} : vector<8x128xi32>
      %25 = tpu.iota {dimensions = array<i32: 1>} : vector<8x128xi32>
      %c128_i32 = arith.constant 128 : i32
      %26 = vector.broadcast %c128_i32 : i32 to vector<8x128xi32>
      %27 = arith.muli %24, %26 : vector<8x128xi32>
      %28 = vector.broadcast %0 : i32 to vector<8x128xi32>
      %29 = arith.addi %28, %27 : vector<8x128xi32>
      %30 = arith.addi %29, %25 : vector<8x128xi32>
      %c800_i32_6 = arith.constant 800 : i32
      %31 = vector.broadcast %c800_i32_6 : i32 to vector<8x128xi32>
      %32 = arith.cmpi slt, %30, %31 : vector<8x128xi32>
      %33 = arith.select %32, %11, %10 : vector<8x128xi1>, vector<8x128xf32>
      %c2048_i32_7 = arith.constant 2048 : i32
      %34 = vector.broadcast %c2048_i32_7 : i32 to vector<8x128xi32>
      %35 = arith.cmpi slt, %30, %34 : vector<8x128xi32>
      %cst_8 = arith.constant 0.000000e+00 : f32
      %36 = vector.broadcast %cst_8 : f32 to vector<8x128xf32>
      %37 = arith.select %35, %33, %36 : vector<8x128xi1>, vector<8x128xf32>
      %38 = vector.shape_cast %37 : vector<8x128xf32> to vector<1x8x128xf32>
      %cst_9 = arith.constant dense<0.000000e+00> : vector<8x128xf32>
      %39 = vector.multi_reduction <add>, %38, %cst_9 [0] : vector<1x8x128xf32> to vector<8x128xf32>
      %c0_10 = arith.constant 0 : index
      %c0_11 = arith.constant 0 : index
      %c0_12 = arith.constant 0 : index
      %40 = vector.load %arg2[%c0_10, %c0_11, %c0_12] : memref<1x8x128xf32, #tpu.memory_space<vmem>>, vector<1x8x128xf32>
      %41 = vector.shape_cast %40 : vector<1x8x128xf32> to vector<8x128xf32>
      %42 = vector.shape_cast %39 : vector<8x128xf32> to vector<1x8x128xf32>
      tpu.vector_store %arg2[%c0_10, %c0_11, %c0_12], %42 {strides = array<i32>} : memref<1x8x128xf32, #tpu.memory_space<vmem>>, vector<1x8x128xf32>,
    } else {
    }
    return
  }
  func.func @transform_0(%arg0: i32) -> (i32, i32) {
    %c0_i32 = arith.constant 0 : i32
    %c0_i32_0 = arith.constant 0 : i32
    return %arg0, %c0_i32 : i32, i32
  }
  func.func @transform_1(%arg0: i32) -> (i32, i32, i32) {
    %c0_i32 = arith.constant 0 : i32
    %c0_i32_0 = arith.constant 0 : i32
    %c0_i32_1 = arith.constant 0 : i32
    return %arg0, %c0_i32, %c0_i32_0 : i32, i32, i32
  }
}

</mosaic_0001>

<bundles_post_ra>
// kernel: link_prediction_loss.1
= control target key start
LH: loop header
LB: loop body
LE: loop exit
PB: predicated region body
PF: predicated region fallthrough
CT: control target
= control target key end

     0   :  { %6 = vsyncpa [#allocation3], 0  ;;  %s508_s0 = inlined_call_operand.hbm [shape: f32[16,128], index: 0, kind: input, shape index: {}]   ;;  %s509_s1 = inlined_call_operand.vmem [shape: f32[2,8,128], index: 1, kind: output, shape index: {}]  }
   0x1   :  { %8 = vsyncpa [#allocation3 + $0x1], 0  ;;  %s378_s6 = smov 0   ;;  %s380_s7 = smov 0  }
   0x2   :  { %s382_s8 = smov 0   ;;  %s384_s9 = smov 0  }
   0x3 LB: > { %s397_s10 = sadd.s32 4294967295, %s365_s9   ;;  %s400_s11 = sadd.s32 1, %s365_s9   ;;  %s365_s9 = sphi %s384_s9, %s521_s9   ;;  %s361_s8 = sphi %s382_s8, %s520_s8   ;;  %s357_s7 = sphi %s380_s7, %s519_s7   ;;  %s353_s6 = sphi %s378_s6, %s518_s6  }
   0x4   : > { %s18_s12 = ssub.s32 %s365_s9, %s400_s11  ;;  %s21_s13 = sadd.s32 1, %s361_s8 }
   0x5   : > { %p19_p0 = scmp.eq.s32.totalorder %s18_s12, 0  ;;  %p28_p1 = scmp.ne.s32.totalorder %s361_s8, %s357_s7 }
   0x6   : > { %p29_p2 = scmp.eq.s32.totalorder %s365_s9, 0  ;;  %p34_p3 = scmp.ne.s32.totalorder %s357_s7, %s353_s6 }
   0x7   : > { %s410_s14 = scalar_select %p19_p0, %s361_s8, %s21_s13  }
   0x8   : > { %p30_p4 = por %p29_p2, %p28_p1  ;;  %p35_p5 = scmp.eq.s32.totalorder %s397_s10, 0 }
   0x9   : > { %p266_p6 = scmp.lt.s32.totalorder %s365_s9, 2  ;;  %s84_s16 = sand.u32 1, %s361_s8  }
   0xa   : > { %p414_p7 = por %p35_p5, %p34_p3  ;;  %s251_s17 = sshll.u32 %s84_s16, 3 }
   0xb   : > { %s252_s18 = sshll.u32 %s365_s9, 7  ;;  %s88_s22 = scalar_lea.vmem [#allocation2], %s251_s17 }
   0xc   : > { %s511_s15 = scalar_select %p414_p7, 1, 0 }
   0xd   : > { %s423_s21 = scalar_lea.hbm %s508_s0, %s252_s18  ;;  %s95_s23 = sshll.u32 %s88_s22, 4  ;;  %s425_s23 = int_to_ptr.vmem [resolvable:$true] %s95_s23 }
   0xe   : > { %p427_p8 = pnand %p266_p6, %p30_p4  ;;  %s85_s25 = scalar_lea.sflag [#allocation3], %s84_s16 }
   0xf   : > { %s303_s26 = scalar_lea.hbm %s423_s21, 128  ;;  %s308_s29 = scalar_lea.hbm %s508_s0, 256 }
  0x10   : > { %p304_p11 = scmp.ne.s32.totalorder %s423_s21, %s303_s26  ;;  %p305_p12 = pneg %p427_p8 }
  0x11   : > { %p309_p1 = scmp.lt.s32.totalorder %s423_s21, %s508_s0  ;;  %p310_p2 = scmp.lt.s32.totalorder %s308_s29, %s303_s26 }
  0x12   : > { %p306_p13 = pnand %p305_p12, %p304_p11 }
  0x13   : > { %p311_p3 = por %p310_p2, %p309_p1 }
  0x14   : > { %p307_p0 = pneg %p306_p13 }
  0x16   : > { %p312_p4 = pnand %p311_p3, %p307_p0 }
  0x18   : > { %315 = shalt.err (!%p312_p4)
}
  0x19   : > { %s316_s3 = scalar_lea.vmem %s425_s23, 128  ;;  %s367_s4 = smov [#allocation2]  }
  0x1a   : > { %p317_p5 = scmp.ne.s32.totalorder %s425_s23, %s316_s3  ;;  %s321_s5 = sshll.u32 %s367_s4, 4  ;;  %s322_s5 = int_to_ptr.vmem [resolvable:$false] %s321_s5 }
  0x1b   : > { %s323_s6 = scalar_lea.vmem %s322_s5, 256  ;;  %p324_p13 = scmp.lt.s32.totalorder %s425_s23, %s322_s5 }
  0x1c   : > { %p319_p6 = pnand %p317_p5, %p305_p12  ;;  %p325_p9 = scmp.lt.s32.totalorder %s323_s6, %s316_s3 }
  0x1e   : > { %p320_p11 = pneg %p319_p6  ;;  %p326_p10 = por %p325_p9, %p324_p13 }
  0x20   : > { %p327_p7 = pnand %p326_p10, %p320_p11 }
  0x22   : > { %330 = shalt.err (!%p327_p7)
}
  0x23   : > { %265 = dma.hbm_to_vmem [thread:$0]  (!%p427_p8), %s423_s21, 128, %s425_s23, %s85_s25  }
  0x24   : > { %p513_p0 = scmp.lt.s32.totalorder %s365_s9, 3  ;;  %p514_p1 = scmp.ge.s32.totalorder %s365_s9, 1 }
  0x26   : > { %p101_p12 = pnand %p514_p1, %p513_p0 }
  0x27   : > { %s106_s12 = sand.u32 (!%p101_p12), 1, %s357_s7   ;;  %p515_p9 = scmp.ne.s32.totalorder (!%p101_p12), %s511_s15, 0 }
  0x28   : > { %104 = sbr.rel (%p101_p12) target bundleno = 116 (0x74), region = 24  ;;  %s254_s13 = sshll.u32 (!%p101_p12), %s106_s12, 3 }
  0x29   : > { %s107_s16 = scalar_lea.sflag (!%p101_p12), [#allocation3], %s106_s12  ;;  %s110_s17 = scalar_lea.vmem (!%p101_p12), [#allocation2], %s254_s13 }
  0x2d   : > { %348 = dma.done.wait (%p515_p9), %s107_s16, 128  }
  0x2e   : > { %350 = vsyncadd (%p515_p9), %s107_s16, 4294967168  ;;  %p128_p7 = scmp.lt.s32.totalorder %s397_s10, 1  ;;  %s462_s18 = sshll.u32 %s397_s10, 10  ;;  %v134_v0 = vld [vmem:[%s110_s17] sm:$0xff] }
  0x2f   : > { %s465_s9 = sadd.s32 1024, %s462_s18  ;;  %p152_p8 = scmp.ge.s32.totalorder %s462_s18, 800  ;;  %v136_v1 = vand.u32 2147483647, %v134_v0  ;;  %v135_v11 = vmax.f32 %v134_v0, 0.0 }
  0x30   : > { %s523_s10 = smov (!%p128_p7, %s397_s10), 1  ;;  %p153_p10 = scmp.le.s32.totalorder %s465_s9, 2048 }
  0x31   : > { %s255_s19 = sshll.u32 %s523_s10, 3  ;;  %p151_p2 = scmp.le.s32.totalorder %s465_s9, 800  ;;  %v137_v2 = vsub.f32 0.0, %v136_v1 }
  0x32   : > { %s474_s21 = scalar_lea.vmem %s509_s1, %s255_s19  ;;  %p476_p3 = pnand %p153_p10, %p152_p8 }
  0x33   : > { %v138_v3 = vmul.f32 1.442695, %v137_v2  ;;  %p257_p6 = scmp.gt.s32.totalorder %s465_s9, 800 }
  0x34   : > { %p155_p4 = pneg %p476_p3 }
  0x35   : > { %299 = vpow2.f32 %v138_v3 }
  0x36   : > { %p482_p5 = por %p155_p4, %p151_p2 }
  0x42   : > { %v300_v4 = vpop.eup %299 }
  0x43   : > { %v140_v5 = vadd.f32 1.0, %v300_v4  ;;  %v143_v6 = vmul.f32 -0.5, %v300_v4  ;;  %v146_v8 = vand.u32 2147483647, %v300_v4 }
  0x45   : > { %301 = vlog2.f32 %v140_v5  ;;  %v144_v7 = vadd.f32 1.0, %v143_v6  ;;  %vm147_vm0 = vcmp.lt.f32.partialorder %v146_v8, 0.0004427343 }
  0x47   : > { %v145_v9 = vmul.f32 %v300_v4, %v144_v7 }
  0x52   : > { %v302_v10 = vpop.eup %301 }
  0x53   : > { %v142_v12 = vmul.f32 0.6931472, %v302_v10 }
  0x54   : > { %160 = sbr.rel (%p257_p6) target bundleno = 91 (0x5b), region = 32 }
  0x55   : > { %v148_v13 = vsel %vm147_vm0, %v145_v9, %v142_v12 }
  0x56   : > { %v149_v14 = vadd.f32 %v148_v13, %v135_v11 }
  0x58   : > { %v150_v15 = vsub.f32 %v149_v14, %v134_v0 }
  0x5a   : > { %162 = vst [vmem:[%s474_s21] sm:$0xff] %v150_v15 }
  0x5b PF: > { %164 = sbr.rel (%p476_p3) target bundleno = 97 (0x61), region = 36 }
  0x60   : > { %166 = vst [vmem:[%s474_s21] sm:$0xff] %v149_v14 }
  0x61 PF: > { %168 = sbr.rel (%p482_p5) target bundleno = 116 (0x74), region = 40 }
  0x66   : > { %v169_v16 = vlaneseq  ;;  %v174_v18 = vstv %s462_s18 }
  0x68   : > { %v170_v17 = vshrl.u32 %v169_v16, 7  ;;  %v172_v19 = vand.u32 127, %v169_v16 }
  0x6a   : > { %v173_v20 = vmul.u32 128, %v170_v17 }
  0x6c   : > { %v175_v21 = vadd.s32 %v174_v18, %v173_v20 }
  0x6e   : > { %v176_v22 = vadd.s32 %v175_v21, %v172_v19 }
  0x70   : > { %vm177_vm1 = vcmp.lt.s32.totalorder %v176_v22, 800  ;;  %vm179_vm2 = vcmp.lt.s32.totalorder %v176_v22, 2048 }
  0x71   : > { %v178_v23 = vsel %vm177_vm1, %v150_v15, %v149_v14 }
  0x72   : > { %v180_v24 = vsel %vm179_vm2, %v178_v23, 0.0 }
  0x73   : > { %182 = vst [vmem:[%s474_s21] sm:$0xff] %v180_v24 }
  0x74 PF: > { %p11_p11 = scmp.ge.s32.totalorder %s400_s11, 4   ;;  %s518_s6 = smov %s357_s7 }
  0x75   : > { %s519_s7 = smov %s361_s8  ;;  %s520_s8 = smov %s410_s14 }
  0x76   : > { %s521_s9 = smov %s400_s11  ;;  %13 = sbr.rel (!%p11_p11) target bundleno = 3 (0x3), region = 76 }
  0x7b   :  { %202 = vsyncpa [#allocation3], 1 }
  0x7c   :  { %204 = vsyncpa [#allocation3 + $0x1], 1 }

</bundles_post_ra>
